<compile_context>
chip_gen: v5e
topology: v5e:2x2
jax: 0.10.0
libtpu: 0.0.40
codegen_flags: <defaults>
</compile_context>

<pallas_src>
import math

import jax
import jax.numpy as jnp
from jax.experimental import pallas as pl
from jax.experimental.pallas import tpu as pltpu

_LANES = 128
_MAX_BLOCK_ROWS = 2048  # 2048*128*4B = 1 MiB per f32 stream per pipeline buffer


def _round_up(x, m):
    return ((x + m - 1) // m) * m


def _sublane_align(dtype):
    # f32 -> 8, bf16/f16 -> 16, int8/fp8 -> 32 sublane packing.
    return 8 * (4 // jnp.dtype(dtype).itemsize)


def _flat_stream(x):
    """Ravel (free reshape), keep bf16/f16 native (else cast to f32), pad to a multiple
    of 128 lanes only if needed, view as a (rows, 128) slab."""
    flat = jnp.ravel(x)
    if flat.dtype not in (jnp.float32, jnp.bfloat16, jnp.float16):
        flat = flat.astype(jnp.float32)
    n = int(flat.shape[0])
    rows = max(1, math.ceil(n / _LANES))
    pad = rows * _LANES - n
    if pad:
        flat = jnp.pad(flat, (0, pad))
    return flat.reshape(rows, _LANES), n, rows


def _make_kernel(block_rows, mse_tiles, n_lines, n_desc, have_desc):
    r8 = block_rows // 8
    blk_elems = block_rows * _LANES

    def kernel(*refs):
        if have_desc:
            pl_ref, gl_ref, pd_ref, gd_ref, out_ref, acc_mse, acc_bce = refs
        else:
            pl_ref, gl_ref, out_ref, acc_mse, acc_bce = refs

        i = pl.program_id(0)

        @pl.when(i == 0)
        def _():
            acc_mse[...] = jnp.zeros_like(acc_mse)
            acc_bce[...] = jnp.zeros_like(acc_bce)

        # Flat element index of every lane inside the current block (section-local).
        row_ids = jax.lax.broadcasted_iota(jnp.int32, (block_rows, _LANES), 0)
        lane_ids = jax.lax.broadcasted_iota(jnp.int32, (block_rows, _LANES), 1)
        in_block_idx = row_ids * _LANES + lane_ids

        @pl.when(i < mse_tiles)
        def _():
            base = i * blk_elems
            mask = (in_block_idx + base) < n_lines
            p = pl_ref[...].astype(jnp.float32)
            g = gl_ref[...].astype(jnp.float32)
            d = jnp.where(mask, p - g, 0.0)
            acc_mse[...] += jnp.sum((d * d).reshape(r8, 8, _LANES), axis=0)

        if have_desc:

            @pl.when(i >= mse_tiles)
            def _():
                base = (i - mse_tiles) * blk_elems
                mask = (in_block_idx + base) < n_desc
                p = jnp.where(mask, pd_ref[...].astype(jnp.float32), 1.0)
                g = jnp.where(mask, gd_ref[...].astype(jnp.float32), 1.0)
                # PyTorch nn.BCELoss clamps the log terms at -100.
                log_p = jnp.maximum(jnp.log(p), -100.0)
                log_1mp = jnp.maximum(jnp.log1p(-p), -100.0)
                bce = -(g * log_p + (1.0 - g) * log_1mp)
                acc_bce[...] += jnp.sum(bce.reshape(r8, 8, _LANES), axis=0)

        @pl.when(i == pl.num_programs(0) - 1)
        def _():
            out_ref[0, 0] = jnp.sum(acc_mse[...])
            out_ref[0, 1] = jnp.sum(acc_bce[...])

    return kernel


def line_segment_loss(pred_lines, gt_lines, pred_desc=None, gt_desc=None):
    """JAX/Pallas equivalent of LineSegmentLoss.forward. Returns a scalar f32."""
    have_desc = pred_desc is not None and gt_desc is not None

    pl_slab, n_lines, rows_l = _flat_stream(pred_lines)
    gl_slab, _, _ = _flat_stream(gt_lines)
    inputs = [pl_slab, gl_slab]
    align = max(_sublane_align(pl_slab.dtype), _sublane_align(gl_slab.dtype))

    n_desc, rows_d = 0, 0
    if have_desc:
        pd_slab, n_desc, rows_d = _flat_stream(pred_desc)
        gd_slab, _, _ = _flat_stream(gt_desc)
        inputs += [pd_slab, gd_slab]
        align = max(align, _sublane_align(pd_slab.dtype), _sublane_align(gd_slab.dtype))

    # Adaptive block size: large enough to amortize per-step overhead, aligned to the
    # strictest sublane packing among the streamed dtypes, never above _MAX_BLOCK_ROWS.
    rows_for_block = max(rows_l, rows_d)
    block_rows = min(_MAX_BLOCK_ROWS, _round_up(rows_for_block, align))

    mse_tiles = pl.cdiv(rows_l, block_rows)
    bce_tiles = pl.cdiv(rows_d, block_rows) if have_desc else 0
    num_tiles = mse_tiles + bce_tiles

    block = (block_rows, _LANES)
    lines_last = mse_tiles - 1
    lines_spec = pl.BlockSpec(block, lambda i: (jnp.minimum(i, lines_last), 0))
    in_specs = [lines_spec, lines_spec]
    if have_desc:
        desc_last = bce_tiles - 1
        desc_spec = pl.BlockSpec(
            block, lambda i: (jnp.clip(i - mse_tiles, 0, desc_last), 0))
        in_specs += [desc_spec, desc_spec]

    kernel = _make_kernel(block_rows, mse_tiles, n_lines, n_desc, have_desc)

    out = pl.pallas_call(
        kernel,
        out_shape=jax.ShapeDtypeStruct((1, 2), jnp.float32),
        grid=(num_tiles,),
        in_specs=in_specs,
        out_specs=pl.BlockSpec(memory_space=pltpu.SMEM),
        scratch_shapes=[
            pltpu.VMEM((8, _LANES), jnp.float32),
            pltpu.VMEM((8, _LANES), jnp.float32),
        ],
        compiler_params=pltpu.CompilerParams(
            dimension_semantics=("arbitrary",),
            vmem_limit_bytes=32 * 1024 * 1024,
        ),
    )(*inputs)

    line_loss = out[0, 0] / jnp.float32(n_lines)
    if have_desc:
        return line_loss + out[0, 1] / jnp.float32(n_desc)
    return line_loss


if __name__ == "__main__":
    key = jax.random.PRNGKey(0)
    k1, k2, k3, k4 = jax.random.split(key, 4)

    # pred_lines / gt_lines: (batch=2, num_lines=8, 4) line-segment endpoints
    pred_lines = jax.random.normal(k1, (2, 8, 4), dtype=jnp.float32)
    gt_lines = jax.random.normal(k2, (2, 8, 4), dtype=jnp.float32)

    # pred_desc / gt_desc: (batch=2, num_lines=8, desc_dim=32) probabilities / targets
    pred_desc = jax.nn.sigmoid(jax.random.normal(k3, (2, 8, 32), dtype=jnp.float32))
    gt_desc = (jax.random.uniform(k4, (2, 8, 32)) > 0.5).astype(jnp.float32)

    total = jax.block_until_ready(
        line_segment_loss(pred_lines, gt_lines, pred_desc, gt_desc))

    # Pure-JAX reference check
    ref_mse = jnp.mean((pred_lines - gt_lines) ** 2)
    ref_bce = jnp.mean(-(gt_desc * jnp.log(pred_desc)
                         + (1.0 - gt_desc) * jnp.log1p(-pred_desc)))
    ref = ref_mse + ref_bce
    assert jnp.allclose(total, ref, rtol=1e-5, atol=1e-5), (total, ref)

    # desc=None path
    lines_only = jax.block_until_ready(line_segment_loss(pred_lines, gt_lines))
    assert jnp.allclose(lines_only, ref_mse, rtol=1e-5, atol=1e-5), (lines_only, ref_mse)

    # bf16 descriptor streaming path (upcast to f32 inside the kernel)
    pred_desc_bf = pred_desc.astype(jnp.bfloat16)
    gt_desc_bf = gt_desc.astype(jnp.bfloat16)
    total_bf = jax.block_until_ready(
        line_segment_loss(pred_lines, gt_lines, pred_desc_bf, gt_desc_bf))
    pdb = pred_desc_bf.astype(jnp.float32)
    gdb = gt_desc_bf.astype(jnp.float32)
    ref_bce_bf = jnp.mean(-(gdb * jnp.log(pdb) + (1.0 - gdb) * jnp.log1p(-pdb)))
    assert jnp.allclose(total_bf, ref_mse + ref_bce_bf, rtol=1e-4, atol=1e-4), (
        total_bf, ref_mse + ref_bce_bf)

    print("KERNEL_OK")
</pallas_src>

<mosaic_0001>
module attributes {stable_mosaic.version = 11 : i64} {
  func.func @kernel(%arg0: i32, %arg1: memref<8x128xf32, #tpu.memory_space<vmem>>, %arg2: memref<8x128xf32, #tpu.memory_space<vmem>>, %arg3: memref<8x128xf32, #tpu.memory_space<vmem>>, %arg4: memref<8x128xf32, #tpu.memory_space<vmem>>, %arg5: memref<1x2xf32, #tpu.memory_space<smem>>, %arg6: memref<8x128xf32, #tpu.memory_space<vmem>>, %arg7: memref<8x128xf32, #tpu.memory_space<vmem>>) attributes {dimension_semantics = [#tpu.dimension_semantics<arbitrary>], iteration_bounds = array<i64: 2>, scalar_prefetch = 0 : i64, scratch_operands = 2 : i64, tpu.core_type = #tpu.core_type<tc>, window_params = [{transform_indices = @transform_0, window_bounds = array<i64: 8, 128>}, {transform_indices = @transform_1, window_bounds = array<i64: 8, 128>}, {transform_indices = @transform_2, window_bounds = array<i64: 8, 128>}, {transform_indices = @transform_3, window_bounds = array<i64: 8, 128>}, {transform_indices = @transform_4, window_bounds = array<i64: 1, 2>}]} {
    %c0_i32 = arith.constant 0 : i32
    %0 = arith.cmpi eq, %arg0, %c0_i32 : i32
    %1 = arith.extui %0 : i1 to i32
    %c0_i32_0 = arith.constant 0 : i32
    %2 = arith.cmpi ne, %1, %c0_i32_0 : i32
    scf.if %2 {
      %cst = arith.constant 0.000000e+00 : f32
      %17 = vector.broadcast %cst : f32 to vector<8x128xf32>
      %c0 = arith.constant 0 : index
      %c0_6 = arith.constant 0 : index
      %18 = vector.load %arg6[%c0, %c0_6] : memref<8x128xf32, #tpu.memory_space<vmem>>, vector<8x128xf32>
      tpu.vector_store %arg6[%c0, %c0_6], %17 {strides = array<i32>} : memref<8x128xf32, #tpu.memory_space<vmem>>, vector<8x128xf32>,
      %cst_7 = arith.constant 0.000000e+00 : f32
      %19 = vector.broadcast %cst_7 : f32 to vector<8x128xf32>
      %c0_8 = arith.constant 0 : index
      %c0_9 = arith.constant 0 : index
      %20 = vector.load %arg7[%c0_8, %c0_9] : memref<8x128xf32, #tpu.memory_space<vmem>>, vector<8x128xf32>
      tpu.vector_store %arg7[%c0_8, %c0_9], %19 {strides = array<i32>} : memref<8x128xf32, #tpu.memory_space<vmem>>, vector<8x128xf32>,
    } else {
    }
    %3 = tpu.iota {dimensions = array<i32: 0>} : vector<8x128xi32>
    %4 = tpu.iota {dimensions = array<i32: 1>} : vector<8x128xi32>
    %c128_i32 = arith.constant 128 : i32
    %5 = vector.broadcast %c128_i32 : i32 to vector<8x128xi32>
    %6 = arith.muli %3, %5 : vector<8x128xi32>
    %7 = arith.addi %6, %4 : vector<8x128xi32>
    %c1_i32 = arith.constant 1 : i32
    %8 = arith.cmpi slt, %arg0, %c1_i32 : i32
    %9 = arith.extui %8 : i1 to i32
    %c0_i32_1 = arith.constant 0 : i32
    %10 = arith.cmpi ne, %9, %c0_i32_1 : i32
    scf.if %10 {
      %c1024_i32 = arith.constant 1024 : i32
      %17 = arith.muli %arg0, %c1024_i32 : i32
      %18 = vector.broadcast %17 : i32 to vector<8x128xi32>
      %19 = arith.addi %7, %18 : vector<8x128xi32>
      %c64_i32 = arith.constant 64 : i32
      %20 = vector.broadcast %c64_i32 : i32 to vector<8x128xi32>
      %21 = arith.cmpi slt, %19, %20 : vector<8x128xi32>
      %c0 = arith.constant 0 : index
      %c0_6 = arith.constant 0 : index
      %22 = vector.load %arg1[%c0, %c0_6] : memref<8x128xf32, #tpu.memory_space<vmem>>, vector<8x128xf32>
      %c0_7 = arith.constant 0 : index
      %c0_8 = arith.constant 0 : index
      %23 = vector.load %arg2[%c0_7, %c0_8] : memref<8x128xf32, #tpu.memory_space<vmem>>, vector<8x128xf32>
      %24 = arith.subf %22, %23 : vector<8x128xf32>
      %cst = arith.constant 0.000000e+00 : f32
      %25 = vector.broadcast %cst : f32 to vector<8x128xf32>
      %26 = arith.select %21, %24, %25 : vector<8x128xi1>, vector<8x128xf32>
      %c0_9 = arith.constant 0 : index
      %c0_10 = arith.constant 0 : index
      %27 = vector.load %arg6[%c0_9, %c0_10] : memref<8x128xf32, #tpu.memory_space<vmem>>, vector<8x128xf32>
      %28 = arith.mulf %26, %26 : vector<8x128xf32>
      %29 = vector.shape_cast %28 : vector<8x128xf32> to vector<1x8x128xf32>
      %cst_11 = arith.constant dense<0.000000e+00> : vector<8x128xf32>
      %30 = vector.multi_reduction <add>, %29, %cst_11 [0] : vector<1x8x128xf32> to vector<8x128xf32>
      %31 = arith.addf %27, %30 : vector<8x128xf32>
      %c0_12 = arith.constant 0 : index
      %c0_13 = arith.constant 0 : index
      %32 = vector.load %arg6[%c0_12, %c0_13] : memref<8x128xf32, #tpu.memory_space<vmem>>, vector<8x128xf32>
      tpu.vector_store %arg6[%c0_12, %c0_13], %31 {strides = array<i32>} : memref<8x128xf32, #tpu.memory_space<vmem>>, vector<8x128xf32>,
    } else {
    }
    %c1_i32_2 = arith.constant 1 : i32
    %11 = arith.cmpi sge, %arg0, %c1_i32_2 : i32
    %12 = arith.extui %11 : i1 to i32
    %c0_i32_3 = arith.constant 0 : i32
    %13 = arith.cmpi ne, %12, %c0_i32_3 : i32
    scf.if %13 {
      %c1_i32_6 = arith.constant 1 : i32
      %17 = arith.subi %arg0, %c1_i32_6 : i32
      %c1024_i32 = arith.constant 1024 : i32
      %18 = arith.muli %17, %c1024_i32 : i32
      %19 = vector.broadcast %18 : i32 to vector<8x128xi32>
      %20 = arith.addi %7, %19 : vector<8x128xi32>
      %c512_i32 = arith.constant 512 : i32
      %21 = vector.broadcast %c512_i32 : i32 to vector<8x128xi32>
      %22 = arith.cmpi slt, %20, %21 : vector<8x128xi32>
      %c0 = arith.constant 0 : index
      %c0_7 = arith.constant 0 : index
      %23 = vector.load %arg3[%c0, %c0_7] : memref<8x128xf32, #tpu.memory_space<vmem>>, vector<8x128xf32>
      %cst = arith.constant 1.000000e+00 : f32
      %24 = vector.broadcast %cst : f32 to vector<8x128xf32>
      %25 = arith.select %22, %23, %24 : vector<8x128xi1>, vector<8x128xf32>
      %c0_8 = arith.constant 0 : index
      %c0_9 = arith.constant 0 : index
      %26 = vector.load %arg4[%c0_8, %c0_9] : memref<8x128xf32, #tpu.memory_space<vmem>>, vector<8x128xf32>
      %cst_10 = arith.constant 1.000000e+00 : f32
      %27 = vector.broadcast %cst_10 : f32 to vector<8x128xf32>
      %28 = arith.select %22, %26, %27 : vector<8x128xi1>, vector<8x128xf32>
      %29 = math.log %25 : vector<8x128xf32>
      %cst_11 = arith.constant -1.000000e+02 : f32
      %30 = vector.broadcast %cst_11 : f32 to vector<8x128xf32>
      %31 = arith.maximumf %29, %30 : vector<8x128xf32>
      %cst_12 = arith.constant 0.000000e+00 : f32
      %32 = vector.broadcast %cst_12 : f32 to vector<8x128xf32>
      %33 = arith.subf %32, %25 : vector<8x128xf32>
      %34 = math.log1p %33 : vector<8x128xf32>
      %cst_13 = arith.constant -1.000000e+02 : f32
      %35 = vector.broadcast %cst_13 : f32 to vector<8x128xf32>
      %36 = arith.maximumf %34, %35 : vector<8x128xf32>
      %37 = arith.mulf %28, %31 : vector<8x128xf32>
      %cst_14 = arith.constant 1.000000e+00 : f32
      %38 = vector.broadcast %cst_14 : f32 to vector<8x128xf32>
      %39 = arith.subf %38, %28 : vector<8x128xf32>
      %40 = arith.mulf %39, %36 : vector<8x128xf32>
      %41 = arith.addf %37, %40 : vector<8x128xf32>
      %cst_15 = arith.constant 0.000000e+00 : f32
      %42 = vector.broadcast %cst_15 : f32 to vector<8x128xf32>
      %43 = arith.subf %42, %41 : vector<8x128xf32>
      %c0_16 = arith.constant 0 : index
      %c0_17 = arith.constant 0 : index
      %44 = vector.load %arg7[%c0_16, %c0_17] : memref<8x128xf32, #tpu.memory_space<vmem>>, vector<8x128xf32>
      %45 = vector.shape_cast %43 : vector<8x128xf32> to vector<1x8x128xf32>
      %cst_18 = arith.constant dense<0.000000e+00> : vector<8x128xf32>
      %46 = vector.multi_reduction <add>, %45, %cst_18 [0] : vector<1x8x128xf32> to vector<8x128xf32>
      %47 = arith.addf %44, %46 : vector<8x128xf32>
      %c0_19 = arith.constant 0 : index
      %c0_20 = arith.constant 0 : index
      %48 = vector.load %arg7[%c0_19, %c0_20] : memref<8x128xf32, #tpu.memory_space<vmem>>, vector<8x128xf32>
      tpu.vector_store %arg7[%c0_19, %c0_20], %47 {strides = array<i32>} : memref<8x128xf32, #tpu.memory_space<vmem>>, vector<8x128xf32>,
    } else {
    }
    %c1_i32_4 = arith.constant 1 : i32
    %14 = arith.cmpi eq, %arg0, %c1_i32_4 : i32
    %15 = arith.extui %14 : i1 to i32
    %c0_i32_5 = arith.constant 0 : i32
    %16 = arith.cmpi ne, %15, %c0_i32_5 : i32
    scf.if %16 {
      %c0 = arith.constant 0 : index
      %c0_6 = arith.constant 0 : index
      %17 = vector.load %arg6[%c0, %c0_6] : memref<8x128xf32, #tpu.memory_space<vmem>>, vector<8x128xf32>
      %18 = vector.shape_cast %17 : vector<8x128xf32> to vector<1x8x128xf32>
      %cst = arith.constant dense<0.000000e+00> : vector<1xf32>
      %19 = vector.multi_reduction <add>, %18, %cst [1, 2] : vector<1x8x128xf32> to vector<1xf32>
      %20 = vector.shape_cast %19 : vector<1xf32> to vector<1x1x1xf32>
      %21 = vector.extract %20[0, 0, 0] : f32 from vector<1x1x1xf32>
      %c0_7 = arith.constant 0 : index
      %c0_8 = arith.constant 0 : index
      %22 = memref.load %arg5[%c0_7, %c0_8] : memref<1x2xf32, #tpu.memory_space<smem>>
      memref.store %21, %arg5[%c0_7, %c0_8] : memref<1x2xf32, #tpu.memory_space<smem>>
      %c0_9 = arith.constant 0 : index
      %c0_10 = arith.constant 0 : index
      %23 = vector.load %arg7[%c0_9, %c0_10] : memref<8x128xf32, #tpu.memory_space<vmem>>, vector<8x128xf32>
      %24 = vector.shape_cast %23 : vector<8x128xf32> to vector<1x8x128xf32>
      %cst_11 = arith.constant dense<0.000000e+00> : vector<1xf32>
      %25 = vector.multi_reduction <add>, %24, %cst_11 [1, 2] : vector<1x8x128xf32> to vector<1xf32>
      %26 = vector.shape_cast %25 : vector<1xf32> to vector<1x1x1xf32>
      %27 = vector.extract %26[0, 0, 0] : f32 from vector<1x1x1xf32>
      %c0_12 = arith.constant 0 : index
      %c1 = arith.constant 1 : index
      %28 = memref.load %arg5[%c0_12, %c1] : memref<1x2xf32, #tpu.memory_space<smem>>
      memref.store %27, %arg5[%c0_12, %c1] : memref<1x2xf32, #tpu.memory_space<smem>>
    } else {
    }
    return
  }
  func.func @transform_0(%arg0: i32) -> (i32, i32) {
    %c0_i32 = arith.constant 0 : i32
    %0 = arith.minsi %arg0, %c0_i32 : i32
    %c0_i32_0 = arith.constant 0 : i32
    %c0_i32_1 = arith.constant 0 : i32
    return %0, %c0_i32_0 : i32, i32
  }
  func.func @transform_1(%arg0: i32) -> (i32, i32) {
    %c0_i32 = arith.constant 0 : i32
    %0 = arith.minsi %arg0, %c0_i32 : i32
    %c0_i32_0 = arith.constant 0 : i32
    %c0_i32_1 = arith.constant 0 : i32
    return %0, %c0_i32_0 : i32, i32
  }
  func.func @transform_2(%arg0: i32) -> (i32, i32) {
    %c1_i32 = arith.constant 1 : i32
    %0 = arith.subi %arg0, %c1_i32 : i32
    %c0_i32 = arith.constant 0 : i32
    %c0_i32_0 = arith.constant 0 : i32
    %1 = arith.maxsi %c0_i32, %0 : i32
    %2 = arith.minsi %c0_i32_0, %1 : i32
    %c0_i32_1 = arith.constant 0 : i32
    %c0_i32_2 = arith.constant 0 : i32
    return %2, %c0_i32_1 : i32, i32
  }
  func.func @transform_3(%arg0: i32) -> (i32, i32) {
    %c1_i32 = arith.constant 1 : i32
    %0 = arith.subi %arg0, %c1_i32 : i32
    %c0_i32 = arith.constant 0 : i32
    %c0_i32_0 = arith.constant 0 : i32
    %1 = arith.maxsi %c0_i32, %0 : i32
    %2 = arith.minsi %c0_i32_0, %1 : i32
    %c0_i32_1 = arith.constant 0 : i32
    %c0_i32_2 = arith.constant 0 : i32
    return %2, %c0_i32_1 : i32, i32
  }
  func.func @transform_4(%arg0: i32) -> (i32, i32) {
    %c0_i32 = arith.constant 0 : i32
    %c0_i32_0 = arith.constant 0 : i32
    %c0_i32_1 = arith.constant 0 : i32
    return %c0_i32, %c0_i32_0 : i32, i32
  }
}

</mosaic_0001>

<bundles_post_ra>
// kernel: tpu_custom_call.1
= control target key start
LH: loop header
LB: loop body
LE: loop exit
PB: predicated region body
PF: predicated region fallthrough
CT: control target
= control target key end

     0   :  { %9 = vsyncpa [#allocation5], 0  ;;  %s1192_s0 = inlined_call_operand.hbm [shape: f32[1,128], index: 0, kind: input, shape index: {}]   ;;  %s1193_s1 = inlined_call_operand.hbm [shape: f32[1,128], index: 1, kind: input, shape index: {}]   ;;  %s1194_s2 = inlined_call_operand.hbm [shape: f32[4,128], index: 2, kind: input, shape index: {}]   ;;  %s1195_s3 = inlined_call_operand.hbm [shape: f32[4,128], index: 3, kind: input, shape index: {}]   ;;  %s1196_s4 = inlined_call_operand.hbm [shape: f32[1,2], index: 4, kind: output, shape index: {}]  }
   0x1   :  { %11 = vsyncpa [#allocation5 + $0x1], 0 }
   0x2   :  { %12 = vsyncpa [#allocation8], 0 }
   0x3   :  { %14 = vsyncpa [#allocation8 + $0x1], 0 }
   0x4   :  { %15 = vsyncpa [#allocation11], 0 }
   0x5   :  { %17 = vsyncpa [#allocation11 + $0x1], 0 }
   0x6   :  { %18 = vsyncpa [#allocation6], 0  ;;  %s994_s15 = smov 0   ;;  %s996_s16 = smov 0  }
   0x7   :  { %s998_s17 = smov 0   ;;  %s1000_s18 = smov 0  }
   0x8 LB: > { %s1013_s19 = sadd.s32 4294967295, %s953_s18   ;;  %s1016_s20 = sadd.s32 1, %s953_s18   ;;  %s953_s18 = sphi %s1000_s18, %s1207_s18   ;;  %s949_s17 = sphi %s998_s17, %s1206_s17   ;;  %s945_s16 = sphi %s996_s16, %s1205_s16   ;;  %s941_s15 = sphi %s994_s15, %s1204_s15  }
   0x9   : > { %p28_p0 = scmp.lt.s32.totalorder %s953_s18, 0  ;;  %p30_p1 = scmp.lt.s32.totalorder %s1016_s20, 0 }
   0xa   : > { %s35_s21 = sadd.s32 1, %s949_s17  ;;  %p42_p2 = scmp.ne.s32.totalorder %s949_s17, %s945_s16 }
   0xb   : > { %s1024_s22 = scalar_select %p28_p0, %s953_s18, 0 }
   0xc   : > { %s31_s23 = scalar_select %p30_p1, %s1016_s20, 0 }
   0xd   : > { %p43_p3 = scmp.eq.s32.totalorder %s953_s18, 0  ;;  %p48_p4 = scmp.ne.s32.totalorder %s945_s16, %s941_s15 }
   0xe   : > { %s32_s24 = ssub.s32 %s1024_s22, %s31_s23  ;;  %p1197_p5 = scmp.eq.s32.totalorder %s1013_s19, 0 }
   0xf   : > { %p33_p6 = scmp.eq.s32.totalorder %s32_s24, 0  ;;  %p1033_p7 = por %p43_p3, %p42_p2 }
  0x10   : > { %p1039_p8 = por %p1197_p5, %p48_p4  ;;  %p652_p9 = scmp.ge.s32.totalorder %s953_s18, 2 }
  0x11   : > { %s1044_s27 = scalar_select %p33_p6, %s949_s17, %s35_s21  }
  0x12   : > { %191 = sbr.rel (%p652_p9) target bundleno = 105 (0x69), region = 16 }
  0x17   : > { %194 = sbr.rel (!%p1033_p7) target bundleno = 55 (0x37), region = 20  ;;  %s195_s28 = sand.u32 (%p1033_p7), 1, %s949_s17  }
  0x18   : > { %s654_s29 = sshll.u32 (%p1033_p7), %s1024_s22, 3  ;;  %s653_s30 = sshll.u32 (%p1033_p7), %s195_s28, 3 }
  0x19   : > { %s1051_s5 = ssub.s32 (%p1033_p7), 1, %s654_s29  ;;  %s1054_s8 = scalar_lea.sflag (%p1033_p7), [#allocation5], %s195_s28 }
  0x1a   : > { %s204_s6 = ssub.s32 (%p1033_p7), 8, %s1051_s5  ;;  %s199_s9 = scalar_lea.vmem (%p1033_p7), [#allocation4], %s653_s30 }
  0x1b   : > { %s205_s7 = sshll.u32 (%p1033_p7), %s204_s6, 4 }
  0x1c   : > { %206 = vsyncadd %s1054_s8, %s205_s7  ;;  %p655_p10 = scmp.ne.s32.totalorder %s1051_s5, 0  ;;  %s208_s12 = scalar_lea.hbm %s1192_s0, %s654_s29 }
  0x1d   : > { %s209_s13 = sshll.u32 %s208_s12, 4  ;;  %s1061_s14 = sshll.u32 %s199_s9, 4  ;;  %s1063_s13 = int_to_ptr.hbm [resolvable:$true] %s209_s13  ;;  %s212_s14 = int_to_ptr.vmem [resolvable:$true] %s1061_s14 }
  0x1e   : > { %s213_s15 = sshll.u32 %s1051_s5, 4  ;;  %s763_s21 = sshra.s32 %s1063_s13, 4  ;;  %s764_s21 = int_to_ptr.hbm [resolvable:$true] %s763_s21 }
  0x1f   : > { %s765_s23 = sshrl.u32 %s213_s15, 4  ;;  %s774_s30 = scalar_lea.hbm %s1192_s0, 1 }
  0x20   : > { %s770_s24 = scalar_lea.hbm %s764_s21, %s765_s23  ;;  %p775_p0 = scmp.lt.s32.totalorder %s764_s21, %s1192_s0 }
  0x21   : > { %p771_p11 = scmp.ne.s32.totalorder %s764_s21, %s770_s24  ;;  %p776_p1 = scmp.lt.s32.totalorder %s774_s30, %s770_s24 }
  0x23   : > { %p772_p12 = pnand %p771_p11, %p655_p10  ;;  %p777_p2 = por %p776_p1, %p775_p0 }
  0x25   : > { %p773_p13 = pneg %p772_p12 }
  0x27   : > { %p778_p4 = pnand %p777_p2, %p773_p13 }
  0x29   : > { %781 = shalt.err (!%p778_p4)
}
  0x2a   : > { %s782_s9 = sshra.s32 %s212_s14, 4  ;;  %s955_s11 = smov [#allocation4]   ;;  %s783_s9 = int_to_ptr.vmem [resolvable:$true] %s782_s9 }
  0x2b   : > { %s789_s10 = scalar_lea.vmem %s783_s9, %s765_s23  ;;  %s793_s12 = scalar_lea.vmem %s955_s11, 16 }
  0x2c   : > { %p790_p6 = scmp.ne.s32.totalorder %s783_s9, %s789_s10  ;;  %p795_p12 = scmp.lt.s32.totalorder %s793_s12, %s789_s10 }
  0x2e   : > { %p791_p9 = pnand %p790_p6, %p655_p10 }
  0x30   : > { %p792_p11 = pneg %p791_p9 }
  0x32   : > { %p797_p5 = pnand %p795_p12, %p792_p11 }
  0x34   : > { %800 = shalt.err (!%p797_p5)
}
  0x35   : > { %s956_s21 = smov 16   ;;  %s957_s24 = smov 1  }
  0x36   : > { %217 = dma.hbm_to_vmem [thread:$0]  (%p655_p10), %s1063_s13, %s213_s15, %s212_s14, %s1054_s8, %s956_s21, %s956_s21, %s957_s24  }
  0x37 PF: > { %220 = sbr.rel (!%p1033_p7) target bundleno = 87 (0x57), region = 24  ;;  %s221_s23 = sand.u32 (%p1033_p7), 1, %s953_s18  }
  0x38   : > { %s223_s28 = sand.u32 (%p1033_p7), 1, %s949_s17   ;;  %s657_s30 = sshll.u32 (%p1033_p7), %s1024_s22, 3 }
  0x39   : > { %s656_s29 = sshll.u32 (%p1033_p7), %s223_s28, 3  ;;  %s1095_s6 = ssub.s32 (%p1033_p7), 1, %s657_s30 }
  0x3a   : > { %s230_s7 = ssub.s32 (%p1033_p7), 8, %s1095_s6  ;;  %s1098_s10 = scalar_lea.sflag (%p1033_p7), [#allocation8], %s221_s23 }
  0x3b   : > { %s231_s9 = sshll.u32 (%p1033_p7), %s230_s7, 4  ;;  %s225_s5 = scalar_lea.vmem (%p1033_p7), [#allocation7], %s656_s29 }
  0x3c   : > { %232 = vsyncadd %s1098_s10, %s231_s9  ;;  %p658_p5 = scmp.ne.s32.totalorder %s1095_s6, 0  ;;  %s234_s13 = scalar_lea.hbm %s1193_s1, %s657_s30 }
  0x3d   : > { %s235_s22 = sshll.u32 %s234_s13, 4  ;;  %s1105_s14 = sshll.u32 %s225_s5, 4  ;;  %s1107_s22 = int_to_ptr.hbm [resolvable:$true] %s235_s22  ;;  %s238_s14 = int_to_ptr.vmem [resolvable:$true] %s1105_s14 }
  0x3e   : > { %s239_s15 = sshll.u32 %s1095_s6, 4  ;;  %s802_s11 = sshra.s32 %s1107_s22, 4  ;;  %s803_s11 = int_to_ptr.hbm [resolvable:$true] %s802_s11 }
  0x3f   : > { %s804_s12 = sshrl.u32 %s239_s15, 4  ;;  %s813_s28 = scalar_lea.hbm %s1193_s1, 1 }
  0x40   : > { %s809_s21 = scalar_lea.hbm %s803_s11, %s804_s12  ;;  %p814_p0 = scmp.lt.s32.totalorder %s803_s11, %s1193_s1 }
  0x41   : > { %p810_p7 = scmp.ne.s32.totalorder %s803_s11, %s809_s21  ;;  %p815_p1 = scmp.lt.s32.totalorder %s813_s28, %s809_s21 }
  0x43   : > { %p811_p10 = pnand %p810_p7, %p658_p5  ;;  %p816_p2 = por %p815_p1, %p814_p0 }
  0x45   : > { %p812_p13 = pneg %p811_p10 }
  0x47   : > { %p817_p4 = pnand %p816_p2, %p812_p13 }
  0x49   : > { %820 = shalt.err (!%p817_p4)
}
  0x4a   : > { %s821_s7 = sshra.s32 %s238_s14, 4  ;;  %s958_s5 = smov [#allocation7]   ;;  %s822_s7 = int_to_ptr.vmem [resolvable:$true] %s821_s7 }
  0x4b   : > { %s828_s9 = scalar_lea.vmem %s822_s7, %s804_s12  ;;  %s832_s25 = scalar_lea.vmem %s958_s5, 16 }
  0x4c   : > { %p829_p6 = scmp.ne.s32.totalorder %s822_s7, %s828_s9  ;;  %p834_p12 = scmp.lt.s32.totalorder %s832_s25, %s828_s9 }
  0x4e   : > { %p830_p9 = pnand %p829_p6, %p658_p5 }
  0x50   : > { %p831_p11 = pneg %p830_p9 }
  0x52   : > { %p836_p7 = pnand %p834_p12, %p831_p11 }
  0x54   : > { %839 = shalt.err (!%p836_p7)
}
  0x55   : > { %s959_s8 = smov 16   ;;  %s960_s13 = smov 1  }
  0x56   : > { %243 = dma.hbm_to_vmem [thread:$0]  (%p658_p5), %s1107_s22, %s239_s15, %s238_s14, %s1098_s10, %s959_s8, %s959_s8, %s960_s13  }
  0x57 PF: > { %246 = sbr.rel (!%p43_p3) target bundleno = 96 (0x60), region = 28  ;;  %s247_s11 = sand.u32 (%p43_p3), 1, %s953_s18  }
  0x58   : > { %s248_s12 = scalar_lea.sflag (%p43_p3), [#allocation8], %s247_s11 }
  0x5c   : > { %262 = vsyncadd %s248_s12, 64  ;;  %s267_s23 = sshll.u32 %s1194_s2, 4  ;;  %s961_s28 = smov [#allocation9]   ;;  %s268_s23 = int_to_ptr.hbm [resolvable:$true] %s267_s23 }
  0x5d   : > { %s269_s29 = sshll.u32 %s961_s28, 4  ;;  %s962_s30 = smov 64   ;;  %s270_s29 = int_to_ptr.vmem [resolvable:$true] %s269_s29 }
  0x5e   : > { %s963_s7 = smov 4  }
  0x5f   : > { %275 = dma.hbm_to_vmem [thread:$0]  %s268_s23, 64, %s270_s29, %s248_s12, %s962_s30, %s962_s30, %s963_s7  }
  0x60 PF: > { %278 = sbr.rel (!%p43_p3) target bundleno = 105 (0x69), region = 32 }
  0x65   : > { %294 = vsyncadd [#allocation11], 64  ;;  %s299_s22 = sshll.u32 %s1195_s3, 4  ;;  %s964_s14 = smov [#allocation10]   ;;  %s300_s22 = int_to_ptr.hbm [resolvable:$true] %s299_s22 }
  0x66   : > { %s301_s15 = sshll.u32 %s964_s14, 4  ;;  %s965_s9 = smov 64   ;;  %s302_s15 = int_to_ptr.vmem [resolvable:$true] %s301_s15 }
  0x67   : > { %s966_s5 = smov 4  }
  0x68   : > { %307 = dma.hbm_to_vmem [thread:$0]  %s300_s22, 64, %s302_s15, [#allocation11], %s965_s9, %s965_s9, %s966_s5  }
  0x69 PF: > { %p685_p5 = scmp.ge.s32.totalorder %s953_s18, 1  ;;  %p309_p10 = scmp.lt.s32.totalorder %s953_s18, 3 }
  0x6b   : > { %p310_p13 = pnand %p685_p5, %p309_p10 }
  0x6c   : > { %s315_s25 = sand.u32 (!%p310_p13), 1, %s945_s16  }
  0x6d   : > { %313 = sbr.rel (%p310_p13) target bundleno = 390 (0x186), region = 36  ;;  %s1148_s8 = sshll.u32 (!%p310_p13), %s315_s25, 3 }
  0x6e   : > { %s316_s13 = scalar_lea.sflag (!%p310_p13), [#allocation5], %s315_s25  ;;  %s319_s11 = scalar_lea.vmem (!%p310_p13), [#allocation4], %s1148_s8 }
  0x72   : > { %920 = dma.done.wait (%p1039_p8), %s316_s13, 128  }
  0x73   : > { %922 = vsyncadd (%p1039_p8), %s316_s13, 4294967168  ;;  %s325_s12 = sand.u32 1, %s1013_s19   ;;  %s329_s21 = scalar_lea.vmem [#allocation7], %s1148_s8 }
  0x74   : > { %s326_s18 = scalar_lea.sflag [#allocation8], %s325_s12 }
  0x75   : > { %924 = dma.done.wait (%p1039_p8), %s326_s18, 128  }
  0x76   : > { %926 = vsyncadd (%p1039_p8), %s326_s18, 4294967168  ;;  %p1200_p3 = scmp.eq.s32.totalorder %s1013_s19, 0 }
  0x78   : > { %928 = dma.done.wait (%p1200_p3), %s326_s18, 128   ;;  %p1201_p0 = pmov %p1200_p3 }
  0x7a   : > { %930 = vsyncadd (%p1201_p0), %s326_s18, 4294967168  ;;  %p1202_p1 = pmov %p1201_p0 }
  0x7b   : > { %p1203_p2 = pmov %p1201_p0 }
  0x7c   : > { %932 = dma.done.wait (%p1202_p1), [#allocation11], 128  }
  0x7d   : > { %934 = vsyncadd (%p1203_p2), [#allocation11], 4294967168  ;;  %p690_p4 = scmp.ne.s32.totalorder %s1013_s19, 0 }
  0x7f   : > { %412 = sbr.rel (%p690_p4) target bundleno = 135 (0x87), region = 56 }
  0x84   : > { %v967_v0 = vmov 0.0  }
  0x85   : > { %413 = vst [vmem:[#allocation2] sm:$0xff] %v967_v0 }
  0x86   : > { %414 = vst [vmem:[#allocation3] sm:$0xff] %v967_v0 }
  0x87 PF: > { %v415_v1 = vlaneseq  ;;  %p691_p8 = scmp.ge.s32.totalorder %s1013_s19, 1 }
  0x88   : > { %s692_s26 = sshll.u32 (!%p691_p8), %s1013_s19, 10 }
  0x89   : > { %v416_v2 = vshrl.u32 %v415_v1, 7  ;;  %v418_v3 = vand.u32 127, %v415_v1  ;;  %424 = sbr.rel (%p691_p8) target bundleno = 152 (0x98), region = 60 }
  0x8b   : > { %v419_v4 = vmul.u32 128, %v416_v2 }
  0x8d   : > { %v420_v5 = vadd.s32 %v419_v4, %v418_v3 }
  0x8e   : > { %v429_v6 = vld [vmem:[%s319_s11] sm:$0xff]  ;;  %v430_v7 = vld [vmem:[%s329_s21] sm:$0xff]  ;;  %v426_v8 = vstv %s692_s26 }
  0x8f   : > { %v431_v9 = vsub.f32 %v429_v6, %v430_v7  ;;  %v427_v10 = vadd.s32 %v426_v8, %v420_v5  ;;  %v433_v12 = vld [vmem:[#allocation2] sm:$0xff] }
  0x91   : > { %vm428_vm0 = vcmp.lt.s32.totalorder %v427_v10, 64 }
  0x92   : > { %v432_v11 = vsel %vm428_vm0, %v431_v9, 0.0 }
  0x93   : > { %v434_v13 = vmul.f32 %v432_v11, %v432_v11 }
  0x95   : > { %v436_v14 = vadd.f32 %v434_v13, %v433_v12 }
  0x97   : > { %437 = vst [vmem:[#allocation2] sm:$0xff] %v436_v14 }
  0x98 PF: > { %p693_p6 = scmp.lt.s32.totalorder %s1013_s19, 1 }
  0x99   : > { %s694_s24 = sadd.s32 (!%p693_p6), 4294967295, %s1013_s19 }
  0x9a   : > { %441 = sbr.rel (%p693_p6) target bundleno = 189 (0xbd), region = 64  ;;  %s695_s23 = sshll.u32 (!%p693_p6), %s694_s24, 10 }
  0x9f   : > { %v444_v15 = vstv %s695_s23  ;;  %v447_v17 = vld [vmem:[#allocation9] sm:$0xff]  ;;  %v449_v24 = vld [vmem:[#allocation10] sm:$0xff]  ;;  %v470_v38 = vld [vmem:[#allocation3] sm:$0xff] }
  0xa0   : > { %v445_v16 = vadd.s32 %v444_v15, %v420_v5 }
  0xa2   : > { %vm446_vm1 = vcmp.lt.s32.totalorder %v445_v16, 512 }
  0xa3   : > { %v448_v18 = vsel %vm446_vm1, %v447_v17, 1.0  ;;  %v450_v27 = vsel %vm446_vm1, %v449_v24, 1.0 }
  0xa4   : > { %759 = vlog2.f32 %v448_v18  ;;  %v454_v19 = vsub.f32 0.0, %v448_v18  ;;  %v466_v32 = vsub.f32 1.0, %v450_v27 }
  0xa6   : > { %v455_v20 = vadd.f32 1.0, %v454_v19  ;;  %v458_v21 = vmul.f32 -0.5, %v454_v19  ;;  %v461_v25 = vand.u32 2147483647, %v454_v19 }
  0xa8   : > { %761 = vlog2.f32 %v455_v20  ;;  %v459_v22 = vadd.f32 1.0, %v458_v21  ;;  %vm462_vm2 = vcmp.lt.f32.partialorder %v461_v25, 0.0004427343 }
  0xaa   : > { %v760_v23 = vpop.eup %759  ;;  %v460_v28 = vmul.f32 %v459_v22, %v454_v19 }
  0xab   : > { %v452_v26 = vmul.f32 0.6931472, %v760_v23 }
  0xad   : > { %v453_v30 = vmax.f32 %v452_v26, -100.0 }
  0xae   : > { %v762_v29 = vpop.eup %761 }
  0xaf   : > { %v457_v31 = vmul.f32 0.6931472, %v762_v29  ;;  %v465_v35 = vmul.f32 %v453_v30, %v450_v27 }
  0xb1   : > { %v463_v33 = vsel %vm462_vm2, %v460_v28, %v457_v31 }
  0xb2   : > { %v464_v34 = vmax.f32 %v463_v33, -100.0 }
  0xb4   : > { %v467_v36 = vmul.f32 %v466_v32, %v464_v34 }
  0xb6   : > { %v468_v37 = vadd.f32 %v467_v36, %v465_v35 }
  0xb8   : > { %v469_v39 = vsub.f32 0.0, %v468_v37 }
  0xba   : > { %v472_v40 = vadd.f32 %v470_v38, %v469_v39 }
  0xbc   : > { %473 = vst [vmem:[#allocation3] sm:$0xff] %v472_v40 }
  0xbd PF: > { %p696_p9 = scmp.ne.s32.totalorder %s1013_s19, 1 }
  0xbf   : > { %477 = sbr.rel (%p696_p9) target bundleno = 384 (0x180), region = 68 }
  0xc4   : > { %v478_v41 = vld [vmem:[#allocation2] sm:$0xff]  ;;  %v490_v42 = vld [vmem:[#allocation3] sm:$0xff] }
  0xc5   : > { %479 = vadd.xlane.f32.xlu0 %v478_v41 }
  0xcd   : > { %491 = vadd.xlane.f32.xlu0 %v490_v42 }
 0x138   : > { %v480_v43 = vpop.xlane.xlu0 %479 }
 0x139   : > { %v481_v44 = vrot.slane %v480_v43, 4 }
 0x13b   : > { %v482_v45 = vadd.f32 %v481_v44, %v480_v43 }
 0x13d   : > { %v483_v46 = vrot.slane %v482_v45, 2 }
 0x13f   : > { %v484_v47 = vadd.f32 %v483_v46, %v482_v45 }
 0x140   : > { %v492_v48 = vpop.xlane.xlu0 %491 }
 0x141   : > { %v493_v49 = vrot.slane %v492_v48, 4  ;;  %v485_v50 = vrot.slane %v484_v47, 1 }
 0x143   : > { %v494_v51 = vadd.f32 %v493_v49, %v492_v48  ;;  %v486_v52 = vadd.f32 %v485_v50, %v484_v47 }
 0x145   : > { %v495_v53 = vrot.slane %v494_v51, 2  ;;  %701 = vpush %v486_v52 }
 0x147   : > { %v496_v54 = vadd.f32 %v495_v53, %v494_v51 }
 0x149   : > { %v497_v55 = vrot.slane %v496_v54, 1 }
 0x14b   : > { %v498_v56 = vadd.f32 %v497_v55, %v496_v54 }
 0x14d   : > { %703 = vpush %v498_v56 }
 0x176   : > { %s702_s28 = spop %701 }
 0x177   : > { %489 = sst [smem:[#allocation12]] %s702_s28 }
 0x17e   : > { %s704_s29 = spop %703 }
 0x17f   : > { %501 = sst [smem:[#allocation12 + $0x1]] %s704_s29 }
 0x180 PF: > { %p713_p11 = scmp.eq.s32.totalorder %s1013_s19, 1  ;;  %s508_s6 = sshll.u32 %s1196_s4, 4  ;;  %s509_s6 = int_to_ptr.hbm [resolvable:$true] %s508_s6 }
 0x181   : > { %s968_s10 = smov [#allocation12]  }
 0x182   : > { %710 = dma.smem_to_hbm (%p713_p11), %s968_s10, 16, %s509_s6, [#allocation6]  }
 0x183   : > { %936 = dma.done.wait (%p713_p11), [#allocation6], 16  }
 0x184   : > { %938 = vsyncadd (%p713_p11), [#allocation6], 4294967280 }
 0x185   : > { %517 = sfence }
 0x186 PF: > { %p21_p12 = scmp.ge.s32.totalorder %s1016_s20, 4   ;;  %s1204_s15 = smov %s945_s16 }
 0x187   : > { %s1205_s16 = smov %s949_s17  ;;  %s1206_s17 = smov %s1044_s27 }
 0x188   : > { %s1207_s18 = smov %s1016_s20  ;;  %23 = sbr.rel (!%p21_p12) target bundleno = 8 (0x8), region = 128 }
 0x18d   :  { %523 = vsyncpa [#allocation5], 1 }
 0x18e   :  { %525 = vsyncpa [#allocation5 + $0x1], 1 }
 0x18f   :  { %526 = vsyncpa [#allocation8], 1 }
 0x190   :  { %528 = vsyncpa [#allocation8 + $0x1], 1 }
 0x191   :  { %529 = vsyncpa [#allocation11], 1 }
 0x192   :  { %531 = vsyncpa [#allocation11 + $0x1], 1 }
 0x193   :  { %532 = vsyncpa [#allocation6], 1 }
 0x194   :  { %534 = vsyncpa [#allocation6 + $0x1], 1 }

</bundles_post_ra>
